<compile_context>
chip_gen: v7x
topology: tpu7x:2x2x1
jax: 0.10.0
libtpu: 0.0.40
codegen_flags: <defaults>
</compile_context>

<pallas_src>
import functools

import jax
import jax.numpy as jnp
from jax.experimental import pallas as pl
from jax.experimental.pallas import tpu as pltpu


INPUT_SIZE = 320
HIDDEN_LAYERS = [128, 64, 32, 16]
# dropout_layers = [0.0, 0.0, 0.0, 0.0] -> no dropout modules are created.


def _round_up(n, m):
    return ((n + m - 1) // m) * m


def _mlp_kernel(x_ref,
                w0_ref, b0_ref,
                w1_ref, b1_ref,
                w2_ref, b2_ref,
                w3_ref, b3_ref,
                w4_ref, b4_ref,
                o_ref):
    """Fused MLP forward for one batch tile.  Writes a lane-dense (1,1,blk) row."""
    cdt = w0_ref.dtype  # compute dtype for the hidden matmuls (bf16 or f32)

    # In-kernel cast (VPU) instead of a separate XLA cast pass over HBM.
    a = x_ref[...].astype(cdt)                                           # (blk, 320)

    # Layer 0: 320 -> 128, ReLU   (MXU, f32 accumulation)
    h = jnp.dot(a, w0_ref[...], preferred_element_type=jnp.float32) + b0_ref[...]
    h = jnp.maximum(h, 0.0)
    # Layer 1: 128 -> 64, ReLU
    h = jnp.dot(h.astype(cdt), w1_ref[...], preferred_element_type=jnp.float32) + b1_ref[...]
    h = jnp.maximum(h, 0.0)
    # Layer 2: 64 -> 32, ReLU
    h = jnp.dot(h.astype(cdt), w2_ref[...], preferred_element_type=jnp.float32) + b2_ref[...]
    h = jnp.maximum(h, 0.0)
    # Layer 3: 32 -> 16, ReLU
    h = jnp.dot(h.astype(cdt), w3_ref[...], preferred_element_type=jnp.float32) + b3_ref[...]
    h = jnp.maximum(h, 0.0)                                              # (blk, 16) f32

    # Output layer 16 -> 1 as (1,16) @ (16,blk): lane-dense (1, blk) result row
    # (XLU transpose of the small (blk,16) activation; avoids a width-1 column
    # which would cost blk/8 masked stores + heavy vreg pressure per tile).
    out = jnp.dot(w4_ref[...], h.T, preferred_element_type=jnp.float32) + b4_ref[...]

    o_ref[...] = out[None].astype(o_ref.dtype)                           # (1, 1, blk)


@functools.partial(jax.jit,
                   static_argnames=("block_b", "compute_dtype", "x_buffer_count"))
def fitness_finding_forward(x, params, *, block_b=1024,
                            compute_dtype=jnp.bfloat16, x_buffer_count=2):
    """x: (B, 320) in the producer's dtype (f32 or bf16).
    params: list of (W (in,out), b (1,out)) in f32.

    Arbitrary B is handled with a clipped last block (no padded copy of x).
    x_buffer_count=3 deepens the x DMA pipeline (useful on DMA-bound v5e).
    """
    B, D = x.shape
    assert D == INPUT_SIZE

    # Tile sizing: >= 2 grid steps once B is large enough (v7x megacore via the
    # "parallel" axis), big tiles otherwise to amortize per-step overhead.
    eff_block = min(block_b, max(8, _round_up(pl.cdiv(B, 2), 8)))
    num_blocks = pl.cdiv(B, eff_block)

    (w0, b0), (w1, b1), (w2, b2), (w3, b3), (w4, b4) = params
    w4_row = w4.reshape(1, -1).astype(jnp.float32)   # (1, 16), stays f32

    flat = [
        x,                                            # producer dtype; cast in-kernel
        w0.astype(compute_dtype), b0.astype(jnp.float32),
        w1.astype(compute_dtype), b1.astype(jnp.float32),
        w2.astype(compute_dtype), b2.astype(jnp.float32),
        w3.astype(compute_dtype), b3.astype(jnp.float32),
        w4_row, b4.astype(jnp.float32),
    ]

    x_index_map = lambda i: (i, 0)
    if x_buffer_count == 2:
        x_spec = pl.BlockSpec((eff_block, D), x_index_map)
    else:
        # Deeper x pipeline for DMA-bound chips (e.g. v5e).
        x_spec = pl.BlockSpec((eff_block, D), x_index_map,
                              pipeline_mode=pl.Buffered(x_buffer_count))

    in_specs = [x_spec]
    for a in flat[1:]:
        # Weights/biases are tiny 2-D arrays: full (untiled) blocks, same every step.
        in_specs.append(pl.BlockSpec(a.shape, lambda i: (0, 0)))

    flops = 2 * B * (320 * 128 + 128 * 64 + 64 * 32 + 32 * 16 + 16 * 1)
    bytes_accessed = (int(x.size) * x.dtype.itemsize
                      + num_blocks * eff_block * 4
                      + sum(int(a.size) * a.dtype.itemsize for a in flat[1:]))

    out = pl.pallas_call(
        _mlp_kernel,
        out_shape=jax.ShapeDtypeStruct((num_blocks, 1, eff_block), jnp.float32),
        grid_spec=pltpu.PrefetchScalarGridSpec(
            num_scalar_prefetch=0,
            grid=(num_blocks,),
            in_specs=in_specs,
            out_specs=pl.BlockSpec((1, 1, eff_block), lambda i: (i, 0, 0)),
        ),
        compiler_params=pltpu.CompilerParams(
            dimension_semantics=("parallel",),
            vmem_limit_bytes=32 * 1024 * 1024,
        ),
        cost_estimate=pl.CostEstimate(
            flops=flops, transcendentals=0, bytes_accessed=bytes_accessed),
    )(*flat)

    # Rows past B (clipped last block) are garbage and discarded here.
    return out.reshape(-1)[:B].reshape(B, 1)


def init_params(key, input_size=INPUT_SIZE, hidden_layers=HIDDEN_LAYERS):
    """Deterministic PyTorch-style (Kaiming-uniform-ish) init.  W stored (in, out)."""
    sizes = [input_size] + list(hidden_layers) + [1]
    params = []
    for i in range(len(sizes) - 1):
        fan_in, fan_out = sizes[i], sizes[i + 1]
        key, kw, kb = jax.random.split(key, 3)
        bound = 1.0 / (fan_in ** 0.5)
        w = jax.random.uniform(kw, (fan_in, fan_out), jnp.float32, -bound, bound)
        b = jax.random.uniform(kb, (1, fan_out), jnp.float32, -bound, bound)
        params.append((w, b))
    return params


def reference_forward(x, params, compute_dtype=jnp.bfloat16):
    """Pure-JAX reference mirroring the kernel's numerics (same casts)."""
    h = x
    for (w, b) in params[:-1]:
        h = jnp.dot(h.astype(compute_dtype), w.astype(compute_dtype),
                    preferred_element_type=jnp.float32) + b.astype(jnp.float32)
        h = jnp.maximum(h, 0.0)
    w4, b4 = params[-1]
    return jnp.dot(h, w4.astype(jnp.float32),
                   preferred_element_type=jnp.float32) + b4.astype(jnp.float32)


if __name__ == "__main__":
    key = jax.random.PRNGKey(0)
    key, kx, kx2 = jax.random.split(key, 3)

    params = init_params(jax.random.PRNGKey(0))

    # Small demo batch.
    B = 16
    x = jax.random.normal(kx, (B, INPUT_SIZE), jnp.float32)

    # Default bf16 MXU path.
    out_bf16 = jax.block_until_ready(fitness_finding_forward(x, params))
    ref_bf16 = reference_forward(x, params, compute_dtype=jnp.bfloat16)
    assert out_bf16.shape == (B, 1), out_bf16.shape
    assert jnp.allclose(out_bf16, ref_bf16, atol=2e-3, rtol=2e-3), "bf16 mismatch"

    # Full f32 path.
    out_f32 = jax.block_until_ready(
        fitness_finding_forward(x, params, compute_dtype=jnp.float32))
    ref_f32 = reference_forward(x, params, compute_dtype=jnp.float32)
    assert jnp.allclose(out_f32, ref_f32, atol=1e-3, rtol=1e-3), "f32 mismatch"

    # Ragged batch exercises the clipped last block (no wrapper-side padding).
    B2 = 13
    x2 = jax.random.normal(kx2, (B2, INPUT_SIZE), jnp.float32)
    out2 = jax.block_until_ready(fitness_finding_forward(x2, params))
    ref2 = reference_forward(x2, params, compute_dtype=jnp.bfloat16)
    assert out2.shape == (B2, 1), out2.shape
    assert jnp.allclose(out2, ref2, atol=2e-3, rtol=2e-3), "ragged-batch mismatch"

    print("KERNEL_OK")
</pallas_src>

<mosaic_0001>
module attributes {stable_mosaic.version = 11 : i64} {
  func.func @_mlp_kernel(%arg0: i32, %arg1: memref<8x320xf32, #tpu.memory_space<vmem>>, %arg2: memref<320x128xbf16, #tpu.memory_space<vmem>>, %arg3: memref<1x128xf32, #tpu.memory_space<vmem>>, %arg4: memref<128x64xbf16, #tpu.memory_space<vmem>>, %arg5: memref<1x64xf32, #tpu.memory_space<vmem>>, %arg6: memref<64x32xbf16, #tpu.memory_space<vmem>>, %arg7: memref<1x32xf32, #tpu.memory_space<vmem>>, %arg8: memref<32x16xbf16, #tpu.memory_space<vmem>>, %arg9: memref<1x16xf32, #tpu.memory_space<vmem>>, %arg10: memref<1x16xf32, #tpu.memory_space<vmem>>, %arg11: memref<1x1xf32, #tpu.memory_space<vmem>>, %arg12: memref<1x1x8xf32, #tpu.memory_space<vmem>>) attributes {dimension_semantics = [#tpu.dimension_semantics<parallel>], iteration_bounds = array<i64: 2>, scalar_prefetch = 0 : i64, scratch_operands = 0 : i64, tpu.core_type = #tpu.core_type<tc>, window_params = [{transform_indices = @transform_0, window_bounds = array<i64: 8, 320>}, {pipeline_mode = #tpu.pipeline_mode<synchronous>, transform_indices = @transform_1, window_bounds = array<i64: 320, 128>}, {pipeline_mode = #tpu.pipeline_mode<synchronous>, transform_indices = @transform_2, window_bounds = array<i64: 1, 128>}, {pipeline_mode = #tpu.pipeline_mode<synchronous>, transform_indices = @transform_3, window_bounds = array<i64: 128, 64>}, {pipeline_mode = #tpu.pipeline_mode<synchronous>, transform_indices = @transform_4, window_bounds = array<i64: 1, 64>}, {pipeline_mode = #tpu.pipeline_mode<synchronous>, transform_indices = @transform_5, window_bounds = array<i64: 64, 32>}, {pipeline_mode = #tpu.pipeline_mode<synchronous>, transform_indices = @transform_6, window_bounds = array<i64: 1, 32>}, {pipeline_mode = #tpu.pipeline_mode<synchronous>, transform_indices = @transform_7, window_bounds = array<i64: 32, 16>}, {pipeline_mode = #tpu.pipeline_mode<synchronous>, transform_indices = @transform_8, window_bounds = array<i64: 1, 16>}, {pipeline_mode = #tpu.pipeline_mode<synchronous>, transform_indices = @transform_9, window_bounds = array<i64: 1, 16>}, {pipeline_mode = #tpu.pipeline_mode<synchronous>, transform_indices = @transform_10, window_bounds = array<i64: 1, 1>}, {transform_indices = @transform_11, window_bounds = array<i64: 1, 1, 8>}]} {
    %c0 = arith.constant 0 : index
    %c0_0 = arith.constant 0 : index
    %0 = vector.load %arg1[%c0, %c0_0] : memref<8x320xf32, #tpu.memory_space<vmem>>, vector<8x320xf32>
    %1 = arith.truncf %0 : vector<8x320xf32> to vector<8x320xbf16>
    %c0_1 = arith.constant 0 : index
    %c0_2 = arith.constant 0 : index
    %2 = vector.load %arg2[%c0_1, %c0_2] : memref<320x128xbf16, #tpu.memory_space<vmem>>, vector<320x128xbf16>
    %cst = arith.constant dense<0.000000e+00> : vector<8x128xf32>
    %3 = tpu.matmul %1, %2, %cst {dimension_numbers = #tpu.dot_dimension_numbers<[1], [0], [0], [1], [0, 0, 1, 1], [], []>} : vector<8x320xbf16>, vector<320x128xbf16>, vector<8x128xf32> -> vector<8x128xf32>
    %c0_3 = arith.constant 0 : index
    %c0_4 = arith.constant 0 : index
    %4 = vector.load %arg3[%c0_3, %c0_4] : memref<1x128xf32, #tpu.memory_space<vmem>>, vector<1x128xf32>
    %5 = vector.broadcast %4 : vector<1x128xf32> to vector<8x128xf32>
    %6 = arith.addf %3, %5 : vector<8x128xf32>
    %cst_5 = arith.constant 0.000000e+00 : f32
    %7 = vector.broadcast %cst_5 : f32 to vector<8x128xf32>
    %8 = arith.maximumf %6, %7 : vector<8x128xf32>
    %9 = arith.truncf %8 : vector<8x128xf32> to vector<8x128xbf16>
    %c0_6 = arith.constant 0 : index
    %c0_7 = arith.constant 0 : index
    %10 = vector.load %arg4[%c0_6, %c0_7] : memref<128x64xbf16, #tpu.memory_space<vmem>>, vector<128x64xbf16>
    %cst_8 = arith.constant dense<0.000000e+00> : vector<8x64xf32>
    %11 = tpu.matmul %9, %10, %cst_8 {dimension_numbers = #tpu.dot_dimension_numbers<[1], [0], [0], [1], [0, 0, 1, 1], [], []>} : vector<8x128xbf16>, vector<128x64xbf16>, vector<8x64xf32> -> vector<8x64xf32>
    %c0_9 = arith.constant 0 : index
    %c0_10 = arith.constant 0 : index
    %12 = vector.load %arg5[%c0_9, %c0_10] : memref<1x64xf32, #tpu.memory_space<vmem>>, vector<1x64xf32>
    %13 = vector.broadcast %12 : vector<1x64xf32> to vector<8x64xf32>
    %14 = arith.addf %11, %13 : vector<8x64xf32>
    %cst_11 = arith.constant 0.000000e+00 : f32
    %15 = vector.broadcast %cst_11 : f32 to vector<8x64xf32>
    %16 = arith.maximumf %14, %15 : vector<8x64xf32>
    %17 = arith.truncf %16 : vector<8x64xf32> to vector<8x64xbf16>
    %c0_12 = arith.constant 0 : index
    %c0_13 = arith.constant 0 : index
    %18 = vector.load %arg6[%c0_12, %c0_13] : memref<64x32xbf16, #tpu.memory_space<vmem>>, vector<64x32xbf16>
    %cst_14 = arith.constant dense<0.000000e+00> : vector<8x32xf32>
    %19 = tpu.matmul %17, %18, %cst_14 {dimension_numbers = #tpu.dot_dimension_numbers<[1], [0], [0], [1], [0, 0, 1, 1], [], []>} : vector<8x64xbf16>, vector<64x32xbf16>, vector<8x32xf32> -> vector<8x32xf32>
    %c0_15 = arith.constant 0 : index
    %c0_16 = arith.constant 0 : index
    %20 = vector.load %arg7[%c0_15, %c0_16] : memref<1x32xf32, #tpu.memory_space<vmem>>, vector<1x32xf32>
    %21 = vector.broadcast %20 : vector<1x32xf32> to vector<8x32xf32>
    %22 = arith.addf %19, %21 : vector<8x32xf32>
    %cst_17 = arith.constant 0.000000e+00 : f32
    %23 = vector.broadcast %cst_17 : f32 to vector<8x32xf32>
    %24 = arith.maximumf %22, %23 : vector<8x32xf32>
    %25 = arith.truncf %24 : vector<8x32xf32> to vector<8x32xbf16>
    %c0_18 = arith.constant 0 : index
    %c0_19 = arith.constant 0 : index
    %26 = vector.load %arg8[%c0_18, %c0_19] : memref<32x16xbf16, #tpu.memory_space<vmem>>, vector<32x16xbf16>
    %cst_20 = arith.constant dense<0.000000e+00> : vector<8x16xf32>
    %27 = tpu.matmul %25, %26, %cst_20 {dimension_numbers = #tpu.dot_dimension_numbers<[1], [0], [0], [1], [0, 0, 1, 1], [], []>} : vector<8x32xbf16>, vector<32x16xbf16>, vector<8x16xf32> -> vector<8x16xf32>
    %c0_21 = arith.constant 0 : index
    %c0_22 = arith.constant 0 : index
    %28 = vector.load %arg9[%c0_21, %c0_22] : memref<1x16xf32, #tpu.memory_space<vmem>>, vector<1x16xf32>
    %29 = vector.broadcast %28 : vector<1x16xf32> to vector<8x16xf32>
    %30 = arith.addf %27, %29 : vector<8x16xf32>
    %cst_23 = arith.constant 0.000000e+00 : f32
    %31 = vector.broadcast %cst_23 : f32 to vector<8x16xf32>
    %32 = arith.maximumf %30, %31 : vector<8x16xf32>
    %c0_24 = arith.constant 0 : index
    %c0_25 = arith.constant 0 : index
    %33 = vector.load %arg10[%c0_24, %c0_25] : memref<1x16xf32, #tpu.memory_space<vmem>>, vector<1x16xf32>
    %34 = tpu.transpose %32, [1, 0] : vector<8x16xf32> -> vector<16x8xf32>
    %cst_26 = arith.constant dense<0.000000e+00> : vector<1x8xf32>
    %35 = tpu.matmul %33, %34, %cst_26 {dimension_numbers = #tpu.dot_dimension_numbers<[1], [0], [0], [1], [0, 0, 1, 1], [], []>} : vector<1x16xf32>, vector<16x8xf32>, vector<1x8xf32> -> vector<1x8xf32>
    %c0_27 = arith.constant 0 : index
    %c0_28 = arith.constant 0 : index
    %36 = vector.load %arg11[%c0_27, %c0_28] : memref<1x1xf32, #tpu.memory_space<vmem>>, vector<1x1xf32>
    %37 = vector.broadcast %36 : vector<1x1xf32> to vector<1x8xf32>
    %38 = arith.addf %35, %37 : vector<1x8xf32>
    %39 = vector.shape_cast %38 : vector<1x8xf32> to vector<1x1x8xf32>
    %c0_29 = arith.constant 0 : index
    %c0_30 = arith.constant 0 : index
    %c0_31 = arith.constant 0 : index
    %40 = vector.load %arg12[%c0_29, %c0_30, %c0_31] : memref<1x1x8xf32, #tpu.memory_space<vmem>>, vector<1x1x8xf32>
    tpu.vector_store %arg12[%c0_29, %c0_30, %c0_31], %39 {strides = array<i32>} : memref<1x1x8xf32, #tpu.memory_space<vmem>>, vector<1x1x8xf32>,
    return
  }
  func.func @transform_0(%arg0: i32) -> (i32, i32) {
    %c0_i32 = arith.constant 0 : i32
    %c0_i32_0 = arith.constant 0 : i32
    return %arg0, %c0_i32 : i32, i32
  }
  func.func @transform_1(%arg0: i32) -> (i32, i32) {
    %c0_i32 = arith.constant 0 : i32
    %c0_i32_0 = arith.constant 0 : i32
    %c0_i32_1 = arith.constant 0 : i32
    return %c0_i32, %c0_i32_0 : i32, i32
  }
  func.func @transform_2(%arg0: i32) -> (i32, i32) {
    %c0_i32 = arith.constant 0 : i32
    %c0_i32_0 = arith.constant 0 : i32
    %c0_i32_1 = arith.constant 0 : i32
    return %c0_i32, %c0_i32_0 : i32, i32
  }
  func.func @transform_3(%arg0: i32) -> (i32, i32) {
    %c0_i32 = arith.constant 0 : i32
    %c0_i32_0 = arith.constant 0 : i32
    %c0_i32_1 = arith.constant 0 : i32
    return %c0_i32, %c0_i32_0 : i32, i32
  }
  func.func @transform_4(%arg0: i32) -> (i32, i32) {
    %c0_i32 = arith.constant 0 : i32
    %c0_i32_0 = arith.constant 0 : i32
    %c0_i32_1 = arith.constant 0 : i32
    return %c0_i32, %c0_i32_0 : i32, i32
  }
  func.func @transform_5(%arg0: i32) -> (i32, i32) {
    %c0_i32 = arith.constant 0 : i32
    %c0_i32_0 = arith.constant 0 : i32
    %c0_i32_1 = arith.constant 0 : i32
    return %c0_i32, %c0_i32_0 : i32, i32
  }
  func.func @transform_6(%arg0: i32) -> (i32, i32) {
    %c0_i32 = arith.constant 0 : i32
    %c0_i32_0 = arith.constant 0 : i32
    %c0_i32_1 = arith.constant 0 : i32
    return %c0_i32, %c0_i32_0 : i32, i32
  }
  func.func @transform_7(%arg0: i32) -> (i32, i32) {
    %c0_i32 = arith.constant 0 : i32
    %c0_i32_0 = arith.constant 0 : i32
    %c0_i32_1 = arith.constant 0 : i32
    return %c0_i32, %c0_i32_0 : i32, i32
  }
  func.func @transform_8(%arg0: i32) -> (i32, i32) {
    %c0_i32 = arith.constant 0 : i32
    %c0_i32_0 = arith.constant 0 : i32
    %c0_i32_1 = arith.constant 0 : i32
    return %c0_i32, %c0_i32_0 : i32, i32
  }
  func.func @transform_9(%arg0: i32) -> (i32, i32) {
    %c0_i32 = arith.constant 0 : i32
    %c0_i32_0 = arith.constant 0 : i32
    %c0_i32_1 = arith.constant 0 : i32
    return %c0_i32, %c0_i32_0 : i32, i32
  }
  func.func @transform_10(%arg0: i32) -> (i32, i32) {
    %c0_i32 = arith.constant 0 : i32
    %c0_i32_0 = arith.constant 0 : i32
    %c0_i32_1 = arith.constant 0 : i32
    return %c0_i32, %c0_i32_0 : i32, i32
  }
  func.func @transform_11(%arg0: i32) -> (i32, i32, i32) {
    %c0_i32 = arith.constant 0 : i32
    %c0_i32_0 = arith.constant 0 : i32
    %c0_i32_1 = arith.constant 0 : i32
    return %arg0, %c0_i32, %c0_i32_0 : i32, i32, i32
  }
}

</mosaic_0001>

<bundles_post_ra>
// kernel: fitness_finding_forward.1
= control target key start
LH: loop header
LB: loop body
LE: loop exit
PB: predicated region body
PF: predicated region fallthrough
CT: control target
= control target key end

     0   :  { %s1322_s19 = smov 0   ;;  %s1491_s0 = inlined_call_operand.vmem [shape: f32[16,320], index: 0, kind: input, shape index: {}]   ;;  %s1492_s1 = inlined_call_operand.vmem [shape: bf16[320,128], index: 1, kind: input, shape index: {}]   ;;  %s1493_s2 = inlined_call_operand.vmem [shape: f32[1,128], index: 2, kind: input, shape index: {}]   ;;  %s1494_s3 = inlined_call_operand.vmem [shape: bf16[128,64], index: 3, kind: input, shape index: {}]   ;;  %s1495_s4 = inlined_call_operand.vmem [shape: f32[1,64], index: 4, kind: input, shape index: {}]   ;;  %s1496_s5 = inlined_call_operand.vmem [shape: bf16[64,32], index: 5, kind: input, shape index: {}]   ;;  %s1497_s6 = inlined_call_operand.vmem [shape: f32[1,32], index: 6, kind: input, shape index: {}]   ;;  %s1498_s7 = inlined_call_operand.vmem [shape: bf16[32,16], index: 7, kind: input, shape index: {}]   ;;  %s1499_s8 = inlined_call_operand.vmem [shape: f32[1,16], index: 8, kind: input, shape index: {}]   ;;  %s1500_s9 = inlined_call_operand.vmem [shape: f32[1,16], index: 9, kind: input, shape index: {}]   ;;  %s1501_s10 = inlined_call_operand.<no memory space> [shape: f32[1,1], index: 10, kind: input, shape index: {}]   ;;  %s1502_s11 = inlined_call_operand.vmem [shape: f32[2,1,8], index: 11, kind: output, shape index: {}]  }
   0x1   :  { %v16_v0 = vstv %s1501_s10 }
   0x2   :  { %17 = vst [vmem:[#allocation2] sm:$0x1] %v16_v0 }
   0x3 LB: > { %s1047_s20 = sadd.s32 4294967295, %s1254_s19   ;;  %p1051_p0 = scmp.ge.s32.totalorder %s1254_s19, 1  ;;  %s1254_s19 = sphi %s1322_s19, %s23_s19  }
   0x4   : > { %p339_p1 = scmp.lt.s32.totalorder %s1254_s19, 3 }
   0x6   : > { %p340_p2 = pnand %p1051_p0, %p339_p1 }
   0x7   : > { %v1214_v1 = vld [vmem:[%s1492_s1 + $0x40] sm:$0xff] (!%p340_p2)   ;;  %v1256_v3 = vmov (!%p340_p2), 0.0   ;;  %v1216_v4 = vld [vmem:[%s1492_s1 + $0x48] sm:$0xff] (!%p340_p2)   ;;  %vm1257_vm0 = vmmov (!%p340_p2), 0   ;;  %v1218_v6 = vld [vmem:[%s1492_s1 + $0x50] sm:$0xff] (!%p340_p2)   ;;  %p377_p3 = scmp.lt.s32.totalorder (!%p340_p2), %s1047_s20, 1 }
   0x8   : > { %343 = sbr.rel (%p340_p2) target bundleno = 1133 (0x46d), region = 64  ;;  %v1215_v2 = vld [vmem:[%s1492_s1] sm:$0xff] (!%p340_p2)   ;;  %1144 = vmatprep.subr.bf16.mxu1 (!%p340_p2), %v1256_v3  ;;  %1098 = vmatprep.subr.bf16.mxu0 (!%p340_p2), %v1214_v1  ;;  %v1217_v5 = vld [vmem:[%s1492_s1 + $0x8] sm:$0xff] (!%p340_p2)   ;;  %v1219_v7 = vld [vmem:[%s1492_s1 + $0x10] sm:$0xff] (!%p340_p2)   ;;  %vm559_vm1 = vcmask (!%p340_p2), 523264   ;;  %vm865_vm2 = vcmask (!%p340_p2), 261120  }
   0x9   : > { %1099 = vmatpush3.bf16.msra.mxu0 (!%p340_p2), %v1215_v2  ;;  %1152 = vmatprep.mubr.msk.bf16.mxu1 (!%p340_p2), %vm1257_vm0, %v1256_v3  ;;  %v1220_v8 = vld [vmem:[%s1492_s1 + $0x58] sm:$0xff] (!%p340_p2)   ;;  %v1224_v9 = vld [vmem:[%s1492_s1 + $0x80] sm:$0xff] (!%p340_p2)   ;;  %v1227_v12 = vld [vmem:[%s1492_s1 + $0x88] sm:$0xff] (!%p340_p2)   ;;  %vm921_vm3 = vcmask (!%p340_p2), 130048   ;;  %vm998_vm4 = vcmask (!%p340_p2), 57344  }
   0xa   : > { %1100 = vmatprep.subr.bf16.mxu0 (!%p340_p2), %v1216_v4  ;;  %v1221_v10 = vld [vmem:[%s1492_s1 + $0x18] sm:$0xff] (!%p340_p2)   ;;  %v1222_v11 = vld [vmem:[%s1492_s1 + $0x60] sm:$0xff] (!%p340_p2)   ;;  %1145 = vmatpush3.bf16.msra.mxu1 (!%p340_p2), %v1224_v9  ;;  %v1225_v14 = vld [vmem:[%s1492_s1 + $0x68] sm:$0xff] (!%p340_p2)  }
   0xb   : > { %1146 = vmatprep.subr.bf16.mxu1 (!%p340_p2), %v1256_v3  ;;  %v1223_v13 = vld [vmem:[%s1492_s1 + $0x20] sm:$0xff] (!%p340_p2)   ;;  %v1230_v15 = vld [vmem:[%s1492_s1 + $0x90] sm:$0xff] (!%p340_p2)   ;;  %v1226_v16 = vld [vmem:[%s1492_s1 + $0x28] sm:$0xff] (!%p340_p2)  }
   0xc   : > { %v1228_v17 = vld [vmem:[%s1492_s1 + $0x70] sm:$0xff] (!%p340_p2)   ;;  %v1233_v21 = vld [vmem:[%s1492_s1 + $0x98] sm:$0xff] (!%p340_p2)   ;;  %v1234_v25 = vld [vmem:[%s1494_s3] sm:$0xff] (!%p340_p2)  }
   0xd   : > { %1101 = vmatpush3.bf16.msra.mxu0 (!%p340_p2), %v1217_v5  ;;  %v1229_v22 = vld [vmem:[%s1492_s1 + $0x30] sm:$0xff] (!%p340_p2)   ;;  %v1231_v23 = vld [vmem:[%s1492_s1 + $0x78] sm:$0xff] (!%p340_p2)   ;;  %v1235_v28 = vld [vmem:[%s1494_s3 + $0x8] sm:$0xff] (!%p340_p2)  }
   0xe   : > { %1102 = vmatprep.subr.bf16.mxu0 (!%p340_p2), %v1218_v6  ;;  %1147 = vmatpush3.bf16.msra.mxu1 (!%p340_p2), %v1227_v12  ;;  %v1232_v26 = vld [vmem:[%s1492_s1 + $0x38] sm:$0xff] (!%p340_p2)   ;;  %v1236_v30 = vld [vmem:[%s1494_s3 + $0x10] sm:$0xff] (!%p340_p2)   ;;  %v1238_v32 = vld [vmem:[%s1494_s3 + $0x20] sm:$0xff] (!%p340_p2)  }
   0xf   : > { %s1504_s20 = smov (!%p377_p3, %s1047_s20), 1  ;;  %1148 = vmatprep.subr.bf16.mxu1 %v1256_v3  ;;  %v1237_v31 = vld [vmem:[%s1494_s3 + $0x18] sm:$0xff]   ;;  %v1239_v33 = vld [vmem:[%s1494_s3 + $0x28] sm:$0xff]   ;;  %v1240_v34 = vld [vmem:[%s1494_s3 + $0x30] sm:$0xff]  }
  0x10   : > { %s1201_s10 = smul.u32 24, %s1504_s20  ;;  %v1241_v35 = vld [vmem:[%s1494_s3 + $0x38] sm:$0xff]   ;;  %v1242_v36 = vld [vmem:[%s1496_s5] sm:$0xff]   ;;  %v1243_v37 = vld [vmem:[%s1496_s5 + $0x8] sm:$0xff]   ;;  %s384_s13 = scalar_lea.vmem %s1502_s11, %s1504_s20 }
  0x11   : > { %1103 = vmatpush3.bf16.msra.mxu0 %v1219_v7  ;;  %v1053_v44 = vld [vmem:[%s1493_s2] ss:$0 sm:$0xff]  ;;  %v1244_v52 = vld [vmem:[%s1496_s5 + $0x10] sm:$0xff]   ;;  %v1245_v53 = vld [vmem:[%s1496_s5 + $0x18] sm:$0xff]  }
  0x12   : > { %1104 = vmatprep.subr.bf16.mxu0 %v1220_v8  ;;  %s381_s14 = scalar_lea.vmem %s1491_s0, %s1201_s10  ;;  %1149 = vmatpush3.bf16.msra.mxu1 %v1230_v15  ;;  %v1075_v54 = vld [vmem:[%s1495_s4] ss:$0 sm:$0xff]  ;;  %v1247_v63 = vld [vmem:[%s1498_s7 + $0x8] sm:$0xff]  }
  0x13   : > { %v387_v18 = vld [vmem:[%s381_s14 + $0x8] sm:$0xff]  ;;  %v388_v19 = vld [vmem:[%s381_s14 + $0x10] sm:$0xff]  ;;  %1150 = vmatprep.subr.bf16.mxu1 %v1256_v3  ;;  %v386_v27 = vld [vmem:[%s381_s14] sm:$0xff] }
  0x14   : > { %v390_v20 = vpack.c.bf16 %v387_v18, %v387_v18  ;;  %v391_v24 = vpack.c.bf16 %v388_v19, %v388_v19  ;;  %v389_v29 = vpack.c.bf16 %v386_v27, %v386_v27  ;;  %v1246_v62 = vld [vmem:[%s1498_s7] sm:$0xff]   ;;  %v917_v18 = vlaneseq }
  0x15   : > { %1105 = vmatpush3.bf16.msra.mxu0 %v1221_v10  ;;  %v1084_v0 = vld [vmem:[%s1497_s6] ss:$0 sm:$0xff] }
  0x16   : > { %1106 = vmatprep.subr.bf16.mxu0 %v1222_v11  ;;  %595 = vmatprep.mubr.bf16.mxu0 %v390_v20  ;;  %v911_v9 = vld [vmem:[#allocation2] sm:$0x1]  ;;  %v918_v19 = vshrl.u32 %v917_v18, 7 }
  0x17   : > { %1151 = vmatpush3.bf16.msra.mxu1 %v1233_v21  ;;  %v1090_v10 = vld [vmem:[%s1499_s8] ss:$0 sm:$0xff] }
  0x18   : > { %1156 = vmatprep.subr.bf16.mxu1 %v1256_v3  ;;  %v919_v20 = vsub.s32 0, %v918_v19 }
  0x19   : > { %1107 = vmatpush3.bf16.msra.mxu0 %v1223_v13 }
  0x1a   : > { %1108 = vmatprep.subr.bf16.mxu0 %v1225_v14  ;;  %1153 = vmatmul.mubr.msk.bf16.vlgmr.msra.gmra.mrb[0].mxu1 %vm559_vm1, %v391_v24 }
  0x1b   : > { %1157 = vmatpush3.bf16.msra.mxu1 %v1234_v25  ;;  %1172 = vmatprep.mubr.msk.bf16.mxu1 %vm1257_vm0, %v1256_v3 }
  0x1c   : > { %1158 = vmatprep.subr.bf16.mxu1 %v1256_v3 }
  0x1d   : > { %1109 = vmatpush3.bf16.msra.mxu0 %v1226_v16 }
  0x1e   : > { %1110 = vmatprep.subr.bf16.mxu0 %v1228_v17  ;;  %v910_v17 = vld [vmem:[%s1500_s9] sm:$0x1] }
  0x1f   : > { %1159 = vmatpush3.bf16.msra.mxu1 %v1235_v28 }
  0x20   : > { %1160 = vmatprep.subr.bf16.mxu1 %v1256_v3 }
  0x21   : > { %1111 = vmatpush3.bf16.msra.mxu0 %v1229_v22 }
  0x22   : > { %1112 = vmatprep.subr.bf16.mxu0 %v1231_v23 }
  0x23   : > { %1161 = vmatpush3.bf16.msra.mxu1 %v1236_v30 }
  0x24   : > { %1162 = vmatprep.subr.bf16.mxu1 %v1256_v3 }
  0x25   : > { %1113 = vmatpush3.bf16.msra.mxu0 %v1232_v26 }
  0x26   : > { %1176 = vmatprep.subr.bf16.mxu0 %v1256_v3 }
  0x27   : > { %1163 = vmatpush3.bf16.msra.mxu1 %v1237_v31 }
  0x28   : > { %596 = vmatmul.mubr.bf16.vlgmr.msra.gmra.mrb[0].mxu0 %v389_v29  ;;  %1164 = vmatprep.subr.bf16.mxu1 %v1256_v3 }
  0x29   : > { %1184 = vmatprep.mubr.msk.bf16.mxu0 %vm1257_vm0, %v1256_v3  ;;  %1177 = vmatpush3.bf16.msra.mxu0 %v1242_v36 }
  0x2a   : > { %1178 = vmatprep.subr.bf16.mxu0 %v1256_v3 }
  0x2b   : > { %1165 = vmatpush3.bf16.msra.mxu1 %v1238_v32 }
  0x2c   : > { %1166 = vmatprep.subr.bf16.mxu1 %v1256_v3 }
  0x2d   : > { %1179 = vmatpush3.bf16.msra.mxu0 %v1243_v37 }
  0x2e   : > { %1180 = vmatprep.subr.bf16.mxu0 %v1256_v3 }
  0x2f   : > { %1167 = vmatpush3.bf16.msra.mxu1 %v1239_v33 }
  0x30   : > { %1168 = vmatprep.subr.bf16.mxu1 %v1256_v3 }
  0x31   : > { %1181 = vmatpush3.bf16.msra.mxu0 %v1244_v52 }
  0x32   : > { %1182 = vmatprep.subr.bf16.mxu0 %v1256_v3 }
  0x33   : > { %1169 = vmatpush3.bf16.msra.mxu1 %v1240_v34 }
  0x34   : > { %1170 = vmatprep.subr.bf16.mxu1 %v1256_v3 }
  0x35   : > { %1183 = vmatpush3.bf16.msra.mxu0 %v1245_v53 }
  0x36   : > { %1188 = vmatprep.subr.bf16.mxu0 %v1256_v3 }
  0x37   : > { %1171 = vmatpush3.bf16.msra.mxu1 %v1241_v35 }
  0x38   : > { %1196 = vmatprep.subr.mxu1 %v1256_v3 }
  0xed   : > { %v637_v38 = vpop.f32.mrb[0].mxu1 }
  0xee   : > { %v1154_v39 = vpop.f32.mrb[1].mxu1 }
  0xef   : > { %v640_v40 = vpop.f32.mrb[2].mxu1 }
  0xf0   : > { %v1155_v41 = vpop.f32.mrb[3].mxu1 }
  0xfb   : > { %v1114_v42 = vpop.f32.mrb[0].mxu0 }
  0xfc   : > { %v1115_v43 = vpop.f32.mrb[1].mxu0 }
  0xfd   : > { %v1116_v45 = vadd.f32 %v1115_v43, %v1114_v42  ;;  %v1117_v46 = vpop.f32.mrb[2].mxu0 }
  0xfe   : > { %v1118_v47 = vpop.f32.mrb[3].mxu0 }
  0xff   : > { %v598_v48 = vadd.f32 %v1116_v45, %v1053_v44 }
 0x101   : > { %v638_v49 = vadd.f32 %v637_v38, %v598_v48 }
 0x103   : > { %v643_v50 = vmax.f32 %v638_v49, 0.0 }
 0x105   : > { %v644_v51 = vpack.c.bf16 %v643_v50, %v643_v50 }
 0x107   : > { %1173 = vmatmul.mubr.bf16.vlgmr.msra.gmra.mrb[4].mxu1 %v644_v51 }
 0x108   : > { %1198 = vmatprep.mubr.msk.f32.mxu1 %vm1257_vm0, %v1256_v3 }
 0x1da   : > { %v750_v55 = vpop.f32.mrb[4].mxu1 }
 0x1db   : > { %v751_v56 = vadd.f32 %v1075_v54, %v750_v55  ;;  %v1174_v57 = vpop.f32.mrb[5].mxu1 }
 0x1dc   : > { %v753_v58 = vpop.f32.mrb[6].mxu1 }
 0x1dd   : > { %v756_v59 = vmax.f32 %v751_v56, 0.0  ;;  %v1175_v60 = vpop.f32.mrb[7].mxu1 }
 0x1df   : > { %v757_v61 = vpack.c.bf16 %v756_v59, %v756_v59 }
 0x1e1   : > { %1185 = vmatmul.mubr.msk.bf16.vlgmr.msra.gmra.mrb[4].mxu0 %vm559_vm1, %v757_v61 }
 0x1e2   : > { %1192 = vmatprep.mubr.msk.bf16.mxu0 %vm1257_vm0, %v1256_v3  ;;  %1189 = vmatpush3.bf16.msra.mxu0 %v1246_v62 }
 0x1e3   : > { %1190 = vmatprep.subr.bf16.mxu0 %v1256_v3  ;;  %v1258_v3 = vmov 0  }
 0x1e4   : > { %1213 = vset.pattern.permute.xlu0 %v1258_v3 }
 0x1e5   : > { %914 = vperm.xlu0 %1213, %v911_v9  }
 0x1e6   : > { %1191 = vmatpush3.bf16.msra.mxu0 %v1247_v63 }
 0x264   : > { %v915_v21 = vpop.permute.xlu0 %914 }
 0x265   : > { %v920_v22 = vrot.slane %v915_v21, %v919_v20 }
 0x2b4   : > { %v834_v1 = vpop.f32.mrb[4].mxu0 }
 0x2b5   : > { %v835_v2 = vadd.f32 %v1084_v0, %v834_v1  ;;  %v1186_v4 = vpop.f32.mrb[5].mxu0 }
 0x2b6   : > { %v837_v5 = vpop.f32.mrb[6].mxu0 }
 0x2b7   : > { %v840_v6 = vmax.f32 %v835_v2, 0.0  ;;  %v1187_v7 = vpop.f32.mrb[7].mxu0 }
 0x2b9   : > { %v841_v8 = vpack.c.bf16 %v840_v6, %v840_v6 }
 0x2bb   : > { %1193 = vmatmul.mubr.msk.bf16.vlgmr.msra.gmra.mrb[8].mxu0 %vm865_vm2, %v841_v8 }
 0x38e   : > { %v903_v11 = vpop.f32.mrb[8].mxu0 }
 0x38f   : > { %v904_v12 = vadd.f32 %v1090_v10, %v903_v11  ;;  %v1194_v13 = vpop.f32.mrb[9].mxu0 }
 0x390   : > { %v906_v14 = vpop.f32.mrb[10].mxu0 }
 0x391   : > { %v909_v15 = vmax.f32 %v904_v12, 0.0  ;;  %v1195_v16 = vpop.f32.mrb[11].mxu0 }
 0x393   : > { %1197 = vmatpush3.xpose.msk.msra.mxu1 %vm921_vm3, %v909_v15 }
 0x396   : > { %1199 = vmatmul.mubr.msk.f32.vlgmr.msra.gmra.mrb[8].mxu1 %vm921_vm3, %v910_v17 }
 0x469   : > { %v994_v23 = vpop.f32.mrb[8].mxu1 }
 0x46a   : > { %v995_v24 = vadd.f32 %v994_v23, %v920_v22  ;;  %v1200_v25 = vpop.f32.mrb[9].mxu1 }
 0x46c   : > { %999 = vst.msk [vmem:[%s384_s13] sm:$0x1] %vm998_vm4, %v995_v24 }
 0x46d PF: > { %s23_s19 = sadd.s32 1, %s1254_s19  }
 0x46e   : > { %p20_p4 = scmp.ge.s32.totalorder %s23_s19, 4  }
 0x470   :  { %22 = sbr.rel (!%p20_p4) target bundleno = 3 (0x3), region = 94 }

</bundles_post_ra>
